<compile_context>
chip_gen: v7x
topology: tpu7x:2x2x1
jax: 0.10.0
libtpu: 0.0.40
codegen_flags: <defaults>
</compile_context>

<pallas_src>
import functools

import jax
import jax.numpy as jnp
from jax.experimental import pallas as pl
from jax.experimental.pallas import tpu as pltpu


# --------------------------------------------------------------------------------------
# Kernel
# --------------------------------------------------------------------------------------
def _div_out_kernel(div_w, x_ref, w1_ref, b1_ref, w2_ref, b2_ref, g_ref, out_ref):
    """One batch tile of DivOutLayer.forward (if_train=True), all branches fused,
    with FOLD batch rows folded into the lane dimension.

    x_ref   : (TB, F*D)              FOLD input rows per tile row, lane-concatenated
    w1_ref  : (F*D, F*(C*M) + F*H)   block-diag fused first layer  [div blocks | em blocks]
    b1_ref  : (1,   F*(C*M) + F*H)
    w2_ref  : (F*(C*M) + F*H, F*C)   block-diag fused second layer, rSE gate folded in
    b2_ref  : (1,   F*C)
    g_ref   : (F*C*M, F*C*M)         block-of-ones (fold-row, class) group indicator
    out_ref : (TB, F*C*M + F*C)      lanes [0, F*C*M): L2-normalized feats,
                                     lanes [F*C*M, end): module output
    """
    x = x_ref[...]

    # Fused first layer (all per-class branches + em branch, FOLD rows at once) -> ReLU.
    h = jnp.dot(x, w1_ref[...], preferred_element_type=jnp.float32) + b1_ref[...]
    h = jnp.maximum(h, 0.0)

    # Fused second layer: per-class scalar heads, em head and the batch-invariant rSE
    # mixing are all folded into w2/b2.  Lands at a 128-lane (vreg) boundary.
    out_ref[:, div_w:] = (jnp.dot(h, w2_ref[...], preferred_element_type=jnp.float32)
                          + b2_ref[...])

    # Per-(row, class) L2 normalization of the div hidden features.
    hk = h[:, :div_w]                                    # lane-0-aligned static slice
    sumsq = jnp.dot(hk * hk, g_ref[...],
                    preferred_element_type=jnp.float32)  # group sum-of-squares, broadcast
    inv = jax.lax.rsqrt(jnp.maximum(sumsq, 1e-24))       # exact; == 1/max(||h_k||, 1e-12)
    out_ref[:, :div_w] = hk * inv                        # lane-dense store


# --------------------------------------------------------------------------------------
# Wrapper
# --------------------------------------------------------------------------------------
def _pick_block_rows(rows, cap=2048):
    """Tile (in folded rows): multiple of 8, <= cap, and >= 2 grid steps when possible
    so both TensorCores on v7x get work."""
    half = -(-rows // 2)                 # cdiv(rows, 2)
    half = ((half + 7) // 8) * 8
    return max(8, min(cap, half, rows))


def fuse_params(params, cls_num, metric_out_dim, em_hidden, in_dim, fold):
    """Pure-JAX, weight-only preprocessing (done once outside the kernel)."""
    (em_w1, em_b1, em_w2, em_b2,
     div_w1, div_b1, div_w2, div_b2, rse_w, rse_b) = params

    C, M, H, D, F = cls_num, metric_out_dim, em_hidden, in_dim, fold
    CM = C * M

    # rSE gate on a ones input is batch-invariant: sigmoid(colsum(rse_w) + rse_b).
    prob = jax.nn.sigmoid(jnp.sum(rse_w, axis=0, keepdims=True) + rse_b)          # (1, C)

    # Base (single-row) fused first layer, div block FIRST (lane-0 aligned in the kernel).
    div_w1_cat = jnp.concatenate([div_w1[k] for k in range(C)], axis=1)           # (D, CM)
    div_b1_cat = jnp.concatenate([div_b1[k] for k in range(C)], axis=1)           # (1, CM)

    # Base fused second layer with the gate folded in:
    #   out = div*(1-p) + em*p = h_div @ (bd*(1-p)) + h_em @ (em_w2*p) + b2.
    bd = jnp.zeros((CM, C), jnp.float32)
    for k in range(C):
        bd = bd.at[k * M:(k + 1) * M, k].set(div_w2[k][:, 0] * (1.0 - prob[0, k]))
    w2_em = em_w2 * prob                                                          # (H, C)
    div_b2_cat = jnp.concatenate([div_b2[k] for k in range(C)], axis=1)           # (1, C)
    b2_base = em_b2 * prob + div_b2_cat * (1.0 - prob)                            # (1, C)

    # Fold F batch rows into lanes: block-diagonal replication of the fused weights.
    # Hidden layout: [div(f=0) | ... | div(f=F-1) | em(f=0) | ... | em(f=F-1)].
    w1 = jnp.zeros((F * D, F * CM + F * H), jnp.float32)
    w2 = jnp.zeros((F * CM + F * H, F * C), jnp.float32)
    for f in range(F):
        w1 = w1.at[f * D:(f + 1) * D, f * CM:(f + 1) * CM].set(div_w1_cat)
        w1 = w1.at[f * D:(f + 1) * D, F * CM + f * H:F * CM + (f + 1) * H].set(em_w1)
        w2 = w2.at[f * CM:(f + 1) * CM, f * C:(f + 1) * C].set(bd)
        w2 = w2.at[F * CM + f * H:F * CM + (f + 1) * H, f * C:(f + 1) * C].set(w2_em)
    b1 = jnp.concatenate([jnp.tile(div_b1_cat, (1, F)), jnp.tile(em_b1, (1, F))], axis=1)
    b2 = jnp.tile(b2_base, (1, F))                                                # (1, F*C)

    # Group indicator: lanes i, j in the same (fold-row, class) block of width M.
    groups = jnp.arange(F * CM) // M
    g = (groups[:, None] == groups[None, :]).astype(jnp.float32)                  # (F*CM, F*CM)
    return w1, b1, w2, b2, g


def div_out_forward(x, params, cls_num, metric_out_dim, em_hidden, fold=4):
    """Returns [out, feats_list] (if_train=True semantics)."""
    B, D = x.shape
    C, M, F = cls_num, metric_out_dim, fold
    CM = C * M

    w1, b1, w2, b2, g = fuse_params(params, C, M, em_hidden, D, F)

    # Pad the batch so the folded row count is a multiple of 8 (sublane-friendly).
    row_pad = F * 8
    B_pad = ((B + row_pad - 1) // row_pad) * row_pad
    if B_pad != B:
        x = jnp.pad(x, ((0, B_pad - B), (0, 0)))
    rows = B_pad // F
    x_fold = x.reshape(rows, F * D)                      # free row-major reshape

    div_w = F * CM                                       # 128 for F=4, C=4, M=8
    comb_w = div_w + F * C                               # 144

    block_rows = _pick_block_rows(rows)
    grid = (pl.cdiv(rows, block_rows),)                  # Pallas clips the partial last block

    def const_spec(arr):
        return pl.BlockSpec(arr.shape, lambda i: (0, 0))  # full array, DMA'd once

    kernel = functools.partial(_div_out_kernel, div_w)
    combined = pl.pallas_call(
        kernel,
        out_shape=jax.ShapeDtypeStruct((rows, comb_w), jnp.float32),
        grid=grid,
        in_specs=[pl.BlockSpec((block_rows, F * D), lambda i: (i, 0)),
                  const_spec(w1), const_spec(b1),
                  const_spec(w2), const_spec(b2), const_spec(g)],
        out_specs=pl.BlockSpec((block_rows, comb_w), lambda i: (i, 0)),
        compiler_params=pltpu.CompilerParams(
            dimension_semantics=("parallel",),            # megacore-shard batch on v7x
            vmem_limit_bytes=48 * 1024 * 1024),           # big tiles fit on v5e/v6e/v7x
    )(x_fold, w1, b1, w2, b2, g)

    feats_flat = combined[:, :div_w].reshape(B_pad, CM)[:B]
    out = combined[:, div_w:].reshape(B_pad, C)[:B]
    feats_list = [feats_flat[:, k * M:(k + 1) * M] for k in range(C)]
    return [out, feats_list]


# --------------------------------------------------------------------------------------
# Parameter init (PyTorch-style Linear init) and pure-JAX reference
# --------------------------------------------------------------------------------------
def init_params(key, in_dim, em_hidden, cls_num, metric_out_dim):
    keys = jax.random.split(key, 3 + 2 * cls_num)

    def lin(k, fan_in, fan_out):
        k1, k2 = jax.random.split(k)
        bound = 1.0 / (fan_in ** 0.5)
        w = jax.random.uniform(k1, (fan_in, fan_out), jnp.float32, -bound, bound)
        b = jax.random.uniform(k2, (1, fan_out), jnp.float32, -bound, bound)
        return w, b

    em_w1, em_b1 = lin(keys[0], in_dim, em_hidden)
    em_w2, em_b2 = lin(keys[1], em_hidden, cls_num)

    dw1, db1, dw2, db2 = [], [], [], []
    for k in range(cls_num):
        w1, b1 = lin(keys[2 + k], in_dim, metric_out_dim)
        w2, b2 = lin(keys[2 + cls_num + k], metric_out_dim, 1)
        dw1.append(w1); db1.append(b1); dw2.append(w2); db2.append(b2)
    div_w1 = jnp.stack(dw1)                  # (C, D, M)
    div_b1 = jnp.stack(db1)                  # (C, 1, M)
    div_w2 = jnp.stack(dw2)                  # (C, M, 1)
    div_b2 = jnp.stack(db2)                  # (C, 1, 1)

    rse_w, rse_b = lin(keys[2 + 2 * cls_num], cls_num, cls_num)

    return (em_w1, em_b1, em_w2, em_b2,
            div_w1, div_b1, div_w2, div_b2,
            rse_w, rse_b)


def reference(x, params, cls_num):
    """Pure-JAX reference of DivOutLayer.forward (if_train=True), unfused."""
    (em_w1, em_b1, em_w2, em_b2,
     div_w1, div_b1, div_w2, div_b2, rse_w, rse_b) = params
    h = jnp.maximum(x @ em_w1 + em_b1, 0.0)
    em = h @ em_w2 + em_b2
    feats, cols = [], []
    for k in range(cls_num):
        hk = jnp.maximum(x @ div_w1[k] + div_b1[k], 0.0)
        nrm = jnp.sqrt(jnp.sum(hk * hk, axis=-1, keepdims=True))
        feats.append(hk / jnp.maximum(nrm, 1e-12))
        cols.append(hk @ div_w2[k] + div_b2[k])
    div = jnp.concatenate(cols, axis=-1)
    prob_em = jax.nn.sigmoid(jnp.ones_like(em) @ rse_w + rse_b)
    out = em * prob_em + div * (1.0 - prob_em)
    return out, feats


# --------------------------------------------------------------------------------------
if __name__ == "__main__":
    B, IN_DIM, EM_HIDDEN = 2, 32, 16
    CLS_NUM, METRIC_OUT_DIM = 4, 8

    key = jax.random.PRNGKey(0)
    kx, kp = jax.random.split(key)
    x = jax.random.normal(kx, (B, IN_DIM), jnp.float32)
    params = init_params(kp, IN_DIM, EM_HIDDEN, CLS_NUM, METRIC_OUT_DIM)

    out, feats = div_out_forward(x, params, CLS_NUM, METRIC_OUT_DIM, EM_HIDDEN)
    out = jax.block_until_ready(out)
    feats = [jax.block_until_ready(f) for f in feats]

    out_ref, feats_ref = reference(x, params, CLS_NUM)
    assert jnp.allclose(out, out_ref, rtol=1e-2, atol=1e-2), "out mismatch"
    for f, fr in zip(feats, feats_ref):
        assert jnp.allclose(f, fr, rtol=1e-2, atol=1e-2), "feat mismatch"

    print("KERNEL_OK")
</pallas_src>

<mosaic_0001>
module attributes {stable_mosaic.version = 11 : i64} {
  func.func @_div_out_kernel(%arg0: i32, %arg1: memref<8x128xf32, #tpu.memory_space<vmem>>, %arg2: memref<128x192xf32, #tpu.memory_space<vmem>>, %arg3: memref<1x192xf32, #tpu.memory_space<vmem>>, %arg4: memref<192x16xf32, #tpu.memory_space<vmem>>, %arg5: memref<1x16xf32, #tpu.memory_space<vmem>>, %arg6: memref<128x128xf32, #tpu.memory_space<vmem>>, %arg7: memref<8x144xf32, #tpu.memory_space<vmem>>) attributes {dimension_semantics = [#tpu.dimension_semantics<parallel>], iteration_bounds = array<i64: 1>, scalar_prefetch = 0 : i64, scratch_operands = 0 : i64, tpu.core_type = #tpu.core_type<tc>, window_params = [{transform_indices = @transform_0, window_bounds = array<i64: 8, 128>}, {pipeline_mode = #tpu.pipeline_mode<synchronous>, transform_indices = @transform_1, window_bounds = array<i64: 128, 192>}, {pipeline_mode = #tpu.pipeline_mode<synchronous>, transform_indices = @transform_2, window_bounds = array<i64: 1, 192>}, {pipeline_mode = #tpu.pipeline_mode<synchronous>, transform_indices = @transform_3, window_bounds = array<i64: 192, 16>}, {pipeline_mode = #tpu.pipeline_mode<synchronous>, transform_indices = @transform_4, window_bounds = array<i64: 1, 16>}, {pipeline_mode = #tpu.pipeline_mode<synchronous>, transform_indices = @transform_5, window_bounds = array<i64: 128, 128>}, {transform_indices = @transform_6, window_bounds = array<i64: 8, 144>}]} {
    %c0 = arith.constant 0 : index
    %c0_0 = arith.constant 0 : index
    %0 = vector.load %arg1[%c0, %c0_0] : memref<8x128xf32, #tpu.memory_space<vmem>>, vector<8x128xf32>
    %c0_1 = arith.constant 0 : index
    %c0_2 = arith.constant 0 : index
    %1 = vector.load %arg2[%c0_1, %c0_2] : memref<128x192xf32, #tpu.memory_space<vmem>>, vector<128x192xf32>
    %cst = arith.constant dense<0.000000e+00> : vector<8x192xf32>
    %2 = tpu.matmul %0, %1, %cst {dimension_numbers = #tpu.dot_dimension_numbers<[1], [0], [0], [1], [0, 0, 1, 1], [], []>} : vector<8x128xf32>, vector<128x192xf32>, vector<8x192xf32> -> vector<8x192xf32>
    %c0_3 = arith.constant 0 : index
    %c0_4 = arith.constant 0 : index
    %3 = vector.load %arg3[%c0_3, %c0_4] : memref<1x192xf32, #tpu.memory_space<vmem>>, vector<1x192xf32>
    %4 = vector.broadcast %3 : vector<1x192xf32> to vector<8x192xf32>
    %5 = arith.addf %2, %4 : vector<8x192xf32>
    %cst_5 = arith.constant 0.000000e+00 : f32
    %6 = vector.broadcast %cst_5 : f32 to vector<8x192xf32>
    %7 = arith.maximumf %5, %6 : vector<8x192xf32>
    %c0_6 = arith.constant 0 : index
    %c0_7 = arith.constant 0 : index
    %8 = vector.load %arg4[%c0_6, %c0_7] : memref<192x16xf32, #tpu.memory_space<vmem>>, vector<192x16xf32>
    %cst_8 = arith.constant dense<0.000000e+00> : vector<8x16xf32>
    %9 = tpu.matmul %7, %8, %cst_8 {dimension_numbers = #tpu.dot_dimension_numbers<[1], [0], [0], [1], [0, 0, 1, 1], [], []>} : vector<8x192xf32>, vector<192x16xf32>, vector<8x16xf32> -> vector<8x16xf32>
    %c0_9 = arith.constant 0 : index
    %c0_10 = arith.constant 0 : index
    %10 = vector.load %arg5[%c0_9, %c0_10] : memref<1x16xf32, #tpu.memory_space<vmem>>, vector<1x16xf32>
    %11 = vector.broadcast %10 : vector<1x16xf32> to vector<8x16xf32>
    %12 = arith.addf %9, %11 : vector<8x16xf32>
    %c0_11 = arith.constant 0 : index
    %c128 = arith.constant 128 : index
    %13 = vector.load %arg7[%c0_11, %c128] : memref<8x144xf32, #tpu.memory_space<vmem>>, vector<8x16xf32>
    tpu.vector_store %arg7[%c0_11, %c128], %12 {strides = array<i32>} : memref<8x144xf32, #tpu.memory_space<vmem>>, vector<8x16xf32>,
    %14 = vector.extract_strided_slice %7 {offsets = [0, 0], sizes = [8, 128], strides = [1, 1]} : vector<8x192xf32> to vector<8x128xf32>
    %15 = arith.mulf %14, %14 : vector<8x128xf32>
    %c0_12 = arith.constant 0 : index
    %c0_13 = arith.constant 0 : index
    %16 = vector.load %arg6[%c0_12, %c0_13] : memref<128x128xf32, #tpu.memory_space<vmem>>, vector<128x128xf32>
    %cst_14 = arith.constant dense<0.000000e+00> : vector<8x128xf32>
    %17 = tpu.matmul %15, %16, %cst_14 {dimension_numbers = #tpu.dot_dimension_numbers<[1], [0], [0], [1], [0, 0, 1, 1], [], []>} : vector<8x128xf32>, vector<128x128xf32>, vector<8x128xf32> -> vector<8x128xf32>
    %cst_15 = arith.constant 1.000000e-24 : f32
    %18 = vector.broadcast %cst_15 : f32 to vector<8x128xf32>
    %19 = arith.maximumf %17, %18 : vector<8x128xf32>
    %20 = math.rsqrt %19 : vector<8x128xf32>
    %21 = arith.mulf %14, %20 : vector<8x128xf32>
    %c0_16 = arith.constant 0 : index
    %c0_17 = arith.constant 0 : index
    %22 = vector.load %arg7[%c0_16, %c0_17] : memref<8x144xf32, #tpu.memory_space<vmem>>, vector<8x128xf32>
    tpu.vector_store %arg7[%c0_16, %c0_17], %21 {strides = array<i32>} : memref<8x144xf32, #tpu.memory_space<vmem>>, vector<8x128xf32>,
    return
  }
  func.func @transform_0(%arg0: i32) -> (i32, i32) {
    %c0_i32 = arith.constant 0 : i32
    %c0_i32_0 = arith.constant 0 : i32
    return %arg0, %c0_i32 : i32, i32
  }
  func.func @transform_1(%arg0: i32) -> (i32, i32) {
    %c0_i32 = arith.constant 0 : i32
    %c0_i32_0 = arith.constant 0 : i32
    %c0_i32_1 = arith.constant 0 : i32
    return %c0_i32, %c0_i32_0 : i32, i32
  }
  func.func @transform_2(%arg0: i32) -> (i32, i32) {
    %c0_i32 = arith.constant 0 : i32
    %c0_i32_0 = arith.constant 0 : i32
    %c0_i32_1 = arith.constant 0 : i32
    return %c0_i32, %c0_i32_0 : i32, i32
  }
  func.func @transform_3(%arg0: i32) -> (i32, i32) {
    %c0_i32 = arith.constant 0 : i32
    %c0_i32_0 = arith.constant 0 : i32
    %c0_i32_1 = arith.constant 0 : i32
    return %c0_i32, %c0_i32_0 : i32, i32
  }
  func.func @transform_4(%arg0: i32) -> (i32, i32) {
    %c0_i32 = arith.constant 0 : i32
    %c0_i32_0 = arith.constant 0 : i32
    %c0_i32_1 = arith.constant 0 : i32
    return %c0_i32, %c0_i32_0 : i32, i32
  }
  func.func @transform_5(%arg0: i32) -> (i32, i32) {
    %c0_i32 = arith.constant 0 : i32
    %c0_i32_0 = arith.constant 0 : i32
    %c0_i32_1 = arith.constant 0 : i32
    return %c0_i32, %c0_i32_0 : i32, i32
  }
  func.func @transform_6(%arg0: i32) -> (i32, i32) {
    %c0_i32 = arith.constant 0 : i32
    %c0_i32_0 = arith.constant 0 : i32
    return %arg0, %c0_i32 : i32, i32
  }
}

</mosaic_0001>

<bundles_post_ra>
// kernel: tpu_custom_call.1
= control target key start
LH: loop header
LB: loop body
LE: loop exit
PB: predicated region body
PF: predicated region fallthrough
CT: control target
= control target key end

     0   :  { %v530_v7 = vmov 0.0   ;;  %v531_v8 = vmov 0.0|0.0   ;;  %s828_s0 = inlined_call_operand.vmem [shape: f32[8,128], index: 0, kind: input, shape index: {}]   ;;  %s829_s1 = inlined_call_operand.vmem [shape: f32[128,192], index: 1, kind: input, shape index: {}]   ;;  %s830_s2 = inlined_call_operand.vmem [shape: f32[1,192], index: 2, kind: input, shape index: {}]   ;;  %s831_s3 = inlined_call_operand.vmem [shape: f32[192,16], index: 3, kind: input, shape index: {}]   ;;  %s832_s4 = inlined_call_operand.vmem [shape: f32[1,16], index: 4, kind: input, shape index: {}]   ;;  %s833_s5 = inlined_call_operand.vmem [shape: f32[128,128], index: 5, kind: input, shape index: {}]   ;;  %s834_s6 = inlined_call_operand.hbm [shape: f32[8,144], index: 6, kind: output, shape index: {}]  }
   0x1   :  { %v26_v0 = vld [vmem:[%s829_s1 + $0x8] sm:$0xff]  ;;  %v28_v1 = vld [vmem:[%s829_s1 + $0x18] sm:$0xff]  ;;  %v25_v2 = vld [vmem:[%s829_s1] sm:$0xff]  ;;  %133 = vmatprep.mubr.f32.mxu0 %v530_v7  ;;  %440 = vmatprep.subr.bf16.mxu1 %v531_v8 }
   0x2   :  { %v408_v3 = vpack.c.bf16 %v28_v1, %v26_v0  ;;  %v27_v4 = vld [vmem:[%s829_s1 + $0x10] sm:$0xff]  ;;  %v30_v5 = vld [vmem:[%s829_s1 + $0x28] sm:$0xff]  ;;  %v32_v6 = vld [vmem:[%s829_s1 + $0x38] sm:$0xff] }
   0x3   :  { %v410_v9 = vpack.c.bf16 %v27_v4, %v25_v2  ;;  %v412_v10 = vpack.c.bf16 %v32_v6, %v30_v5  ;;  %v29_v11 = vld [vmem:[%s829_s1 + $0x20] sm:$0xff]  ;;  %v31_v12 = vld [vmem:[%s829_s1 + $0x30] sm:$0xff]  ;;  %v34_v13 = vld [vmem:[%s829_s1 + $0x48] sm:$0xff] }
   0x4   :  { %409 = vmatprep.subr.bf16.mxu0 %v408_v3  ;;  %v36_v14 = vld [vmem:[%s829_s1 + $0x58] sm:$0xff]  ;;  %v414_v15 = vpack.c.bf16 %v31_v12, %v29_v11  ;;  %v33_v17 = vld [vmem:[%s829_s1 + $0x40] sm:$0xff]  ;;  %v35_v18 = vld [vmem:[%s829_s1 + $0x50] sm:$0xff] }
   0x5   :  { %411 = vmatpush1.bf16.msra.mxu0 %v410_v9  ;;  %v416_v16 = vpack.c.bf16 %v36_v14, %v34_v13  ;;  %v38_v19 = vld [vmem:[%s829_s1 + $0x68] sm:$0xff]  ;;  %v40_v20 = vld [vmem:[%s829_s1 + $0x78] sm:$0xff]  ;;  %v418_v21 = vpack.c.bf16 %v35_v18, %v33_v17  ;;  %v37_v23 = vld [vmem:[%s829_s1 + $0x60] sm:$0xff] }
   0x6   :  { %413 = vmatprep.subr.bf16.mxu0 %v412_v10  ;;  %v420_v22 = vpack.c.bf16 %v40_v20, %v38_v19  ;;  %v39_v24 = vld [vmem:[%s829_s1 + $0x70] sm:$0xff]  ;;  %v42_v25 = vld [vmem:[%s829_s1 + $0x88] sm:$0xff]  ;;  %v44_v26 = vld [vmem:[%s829_s1 + $0x98] sm:$0xff] }
   0x7   :  { %v142_v27 = vld [vmem:[%s831_s3] sm:$0xff]  ;;  %v143_v28 = vld [vmem:[%s831_s3 + $0x8] sm:$0xff]  ;;  %v144_v29 = vld [vmem:[%s831_s3 + $0x10] sm:$0xff]  ;;  %v422_v30 = vpack.c.bf16 %v39_v24, %v37_v23  ;;  %v424_v33 = vpack.c.bf16 %v44_v26, %v42_v25 }
   0x8   :  { %v441_v31 = vpack.c.bf16 %v143_v28, %v142_v27  ;;  %v145_v32 = vld [vmem:[%s831_s3 + $0x18] sm:$0xff]  ;;  %v41_v34 = vld [vmem:[%s829_s1 + $0x80] sm:$0xff]  ;;  %v43_v35 = vld [vmem:[%s829_s1 + $0x90] sm:$0xff] }
   0x9   :  { %415 = vmatpush1.bf16.msra.mxu0 %v414_v15  ;;  %v46_v36 = vld [vmem:[%s829_s1 + $0xa8] sm:$0xff]  ;;  %v48_v37 = vld [vmem:[%s829_s1 + $0xb8] sm:$0xff]  ;;  %v444_v38 = vpack.c.bf16 %v145_v32, %v144_v29  ;;  %v146_v39 = vld [vmem:[%s831_s3 + $0x20] sm:$0xff]  ;;  %v426_v41 = vpack.c.bf16 %v43_v35, %v41_v34 }
   0xa   :  { %417 = vmatprep.subr.bf16.mxu0 %v416_v16  ;;  %442 = vmatpush1.bf16.msra.mxu1 %v441_v31  ;;  %v147_v40 = vld [vmem:[%s831_s3 + $0x28] sm:$0xff]  ;;  %v428_v42 = vpack.c.bf16 %v48_v37, %v46_v36  ;;  %v45_v43 = vld [vmem:[%s829_s1 + $0xa0] sm:$0xff]  ;;  %v47_v44 = vld [vmem:[%s829_s1 + $0xb0] sm:$0xff] }
   0xb   :  { %443 = vmatprep.subr.bf16.mxu1 %v531_v8  ;;  %v50_v45 = vld [vmem:[%s829_s1 + $0xc8] sm:$0xff]  ;;  %v52_v46 = vld [vmem:[%s829_s1 + $0xd8] sm:$0xff]  ;;  %v447_v47 = vpack.c.bf16 %v147_v40, %v146_v39  ;;  %v148_v48 = vld [vmem:[%s831_s3 + $0x30] sm:$0xff]  ;;  %v430_v50 = vpack.c.bf16 %v47_v44, %v45_v43 }
   0xc   :  { %v149_v49 = vld [vmem:[%s831_s3 + $0x38] sm:$0xff]  ;;  %v432_v51 = vpack.c.bf16 %v52_v46, %v50_v45  ;;  %v49_v52 = vld [vmem:[%s829_s1 + $0xc0] sm:$0xff]  ;;  %v51_v53 = vld [vmem:[%s829_s1 + $0xd0] sm:$0xff] }
   0xd   :  { %419 = vmatpush1.bf16.msra.mxu0 %v418_v21  ;;  %v54_v54 = vld [vmem:[%s829_s1 + $0xe8] sm:$0xff]  ;;  %v56_v55 = vld [vmem:[%s829_s1 + $0xf8] sm:$0xff]  ;;  %v450_v56 = vpack.c.bf16 %v149_v49, %v148_v48 }
   0xe   :  { %421 = vmatprep.subr.bf16.mxu0 %v420_v22  ;;  %445 = vmatpush1.bf16.msra.mxu1 %v444_v38 }
   0xf   :  { %446 = vmatprep.subr.bf16.mxu1 %v531_v8 }
  0x11   :  { %423 = vmatpush1.bf16.msra.mxu0 %v422_v30 }
  0x12   :  { %425 = vmatprep.subr.bf16.mxu0 %v424_v33  ;;  %448 = vmatpush1.bf16.msra.mxu1 %v447_v47 }
  0x15   :  { %427 = vmatpush1.bf16.msra.mxu0 %v426_v41 }
  0x16   :  { %429 = vmatprep.subr.bf16.mxu0 %v428_v42 }
  0x17   :  { %11 = vsyncpa [#allocation3], 0  ;;  %449 = vmatprep.subr.bf16.mxu1 %v531_v8  ;;  %v150_v57 = vld [vmem:[%s831_s3 + $0x40] sm:$0xff]  ;;  %v151_v58 = vld [vmem:[%s831_s3 + $0x48] sm:$0xff]  ;;  %v434_v59 = vpack.c.bf16 %v51_v53, %v49_v52  ;;  %v436_v60 = vpack.c.bf16 %v56_v55, %v54_v54  ;;  %vm532_vm0 = vmmov 0   ;;  %v59_v49 = vlaneseq }
  0x18   :  { %v53_v61 = vld [vmem:[%s829_s1 + $0xe0] sm:$0xff]  ;;  %v55_v62 = vld [vmem:[%s829_s1 + $0xf0] sm:$0xff]  ;;  %451 = vmatpush1.bf16.msra.mxu1 %v450_v56  ;;  %v453_v63 = vpack.c.bf16 %v151_v58, %v150_v57  ;;  %v153_v1 = vld [vmem:[%s831_s3 + $0x58] sm:$0xff]  ;;  %vm173_vm1 = vcmask 523264   ;;  %vm247_vm2 = vcmask 130048  }
  0x19   :  { %431 = vmatpush1.bf16.msra.mxu0 %v430_v50  ;;  %452 = vmatprep.subr.bf16.mxu1 %v531_v8  ;;  %v152_v0 = vld [vmem:[%s831_s3 + $0x50] sm:$0xff]  ;;  %v438_v2 = vpack.c.bf16 %v55_v62, %v53_v61  ;;  %v250_v3 = vld [vmem:[%s833_s5] sm:$0xff]  ;;  %v251_v4 = vld [vmem:[%s833_s5 + $0x8] sm:$0xff]  ;;  %v60_v50 = vshrl.u32 %v59_v49, 7 }
  0x1a   :  { %433 = vmatprep.subr.bf16.mxu0 %v432_v51  ;;  %v456_v5 = vpack.c.bf16 %v153_v1, %v152_v0  ;;  %v154_v6 = vld [vmem:[%s831_s3 + $0x60] sm:$0xff]  ;;  %v155_v9 = vld [vmem:[%s831_s3 + $0x68] sm:$0xff]  ;;  %v477_v11 = vpack.c.bf16 %v251_v4, %v250_v3  ;;  %v252_v12 = vld [vmem:[%s833_s5 + $0x10] sm:$0xff] }
  0x1b   :  { %v24_v10 = vld [vmem:[%s828_s0] sm:$0xff]  ;;  %v253_v13 = vld [vmem:[%s833_s5 + $0x18] sm:$0xff]  ;;  %v459_v14 = vpack.c.bf16 %v155_v9, %v154_v6  ;;  %v156_v15 = vld [vmem:[%s831_s3 + $0x70] sm:$0xff]  ;;  %v61_v51 = vsub.s32 0, %v60_v50  ;;  %v65_v53 = vsub.s32 1, %v60_v50 }
  0x1c   :  { %454 = vmatpush1.bf16.msra.mxu1 %v453_v63  ;;  %v157_v16 = vld [vmem:[%s831_s3 + $0x78] sm:$0xff]  ;;  %v480_v17 = vpack.c.bf16 %v253_v13, %v252_v12  ;;  %v254_v18 = vld [vmem:[%s833_s5 + $0x20] sm:$0xff]  ;;  %v255_v19 = vld [vmem:[%s833_s5 + $0x28] sm:$0xff] }
  0x1d   :  { %435 = vmatpush1.bf16.msra.mxu0 %v434_v59  ;;  %455 = vmatprep.subr.bf16.mxu1 %v531_v8  ;;  %v462_v20 = vpack.c.bf16 %v157_v16, %v156_v15  ;;  %v158_v21 = vld [vmem:[%s831_s3 + $0x80] sm:$0xff]  ;;  %v159_v22 = vld [vmem:[%s831_s3 + $0x88] sm:$0xff]  ;;  %v483_v23 = vpack.c.bf16 %v255_v19, %v254_v18  ;;  %v256_v24 = vld [vmem:[%s833_s5 + $0x30] sm:$0xff] }
  0x1e   :  { %437 = vmatprep.subr.bf16.mxu0 %v436_v60  ;;  %v257_v25 = vld [vmem:[%s833_s5 + $0x38] sm:$0xff]  ;;  %v465_v26 = vpack.c.bf16 %v159_v22, %v158_v21  ;;  %v160_v27 = vld [vmem:[%s831_s3 + $0x90] sm:$0xff]  ;;  %v258_v30 = vld [vmem:[%s833_s5 + $0x40] sm:$0xff] }
  0x1f   :  { %v161_v28 = vld [vmem:[%s831_s3 + $0x98] sm:$0xff]  ;;  %v486_v29 = vpack.c.bf16 %v257_v25, %v256_v24  ;;  %v259_v31 = vld [vmem:[%s833_s5 + $0x48] sm:$0xff]  ;;  %v260_v34 = vld [vmem:[%s833_s5 + $0x50] sm:$0xff] }
  0x20   :  { %457 = vmatpush1.bf16.msra.mxu1 %v456_v5  ;;  %v468_v32 = vpack.c.bf16 %v161_v28, %v160_v27  ;;  %v489_v33 = vpack.c.bf16 %v259_v31, %v258_v30  ;;  %v261_v35 = vld [vmem:[%s833_s5 + $0x58] sm:$0xff]  ;;  %v162_v37 = vld [vmem:[%s831_s3 + $0xa0] sm:$0xff]  ;;  %v163_v38 = vld [vmem:[%s831_s3 + $0xa8] sm:$0xff] }
  0x21   :  { %439 = vmatpush1.bf16.msra.mxu0 %v438_v2  ;;  %458 = vmatprep.subr.bf16.mxu1 %v531_v8  ;;  %v492_v36 = vpack.c.bf16 %v261_v35, %v260_v34  ;;  %v262_v39 = vld [vmem:[%s833_s5 + $0x60] sm:$0xff]  ;;  %v471_v40 = vpack.c.bf16 %v163_v38, %v162_v37  ;;  %v263_v41 = vld [vmem:[%s833_s5 + $0x68] sm:$0xff]  ;;  %v164_v43 = vld [vmem:[%s831_s3 + $0xb0] sm:$0xff] }
  0x22   :  { %476 = vmatprep.subr.bf16.mxu0 %v531_v8  ;;  %v495_v42 = vpack.c.bf16 %v263_v41, %v262_v39  ;;  %v165_v44 = vld [vmem:[%s831_s3 + $0xb8] sm:$0xff]  ;;  %v264_v45 = vld [vmem:[%s833_s5 + $0x70] sm:$0xff]  ;;  %v57_v52 = vld [vmem:[%s830_s2] sm:$0x3]  ;;  %s533_s2 = smov [#allocation2]  }
  0x23   :  { %v474_v46 = vpack.c.bf16 %v165_v44, %v164_v43  ;;  %v265_v47 = vld [vmem:[%s833_s5 + $0x78] sm:$0xff]  ;;  %v66_v54 = vrot.slane %v57_v52, %v65_v53  ;;  %s346_s20 = sshll.u32 %s533_s2, 4  ;;  %s347_s20 = int_to_ptr.vmem [resolvable:$true] %s346_s20 }
  0x24   :  { %134 = vmatmul.mubr.f32.vlgmr.msra.gmra.mrb[0].mxu0 %v24_v10  ;;  %460 = vmatpush1.bf16.msra.mxu1 %v459_v14  ;;  %v498_v48 = vpack.c.bf16 %v265_v47, %v264_v45  ;;  %s506_s21 = scalar_lea.vmem %s347_s20, 256  ;;  %p511_p1 = scmp.lt.s32.totalorder %s347_s20, %s347_s20 }
  0x25   :  { %478 = vmatpush3.bf16.msra.mxu0 %v477_v11  ;;  %461 = vmatprep.subr.bf16.mxu1 %v531_v8  ;;  %p507_p0 = scmp.ne.s32.totalorder %s347_s20, %s506_s21  ;;  %p512_p2 = scmp.lt.s32.totalorder %s506_s21, %s506_s21 }
  0x26   :  { %479 = vmatprep.subr.bf16.mxu0 %v531_v8  ;;  %405 = vmatprep.mubr.msk.f32.mxu0 %vm532_vm0, %v530_v7  ;;  %v354_v7 = vld [vmem:[%s832_s4] ss:$0 sm:$0xff] }
  0x27   :  { %p513_p3 = por %p512_p2, %p511_p1 }
  0x28   :  { %463 = vmatpush1.bf16.msra.mxu1 %v462_v20 }
  0x29   :  { %481 = vmatpush3.bf16.msra.mxu0 %v480_v17  ;;  %464 = vmatprep.subr.bf16.mxu1 %v531_v8  ;;  %p514_p4 = pnand %p513_p3, %p507_p0 }
  0x2a   :  { %482 = vmatprep.subr.bf16.mxu0 %v531_v8 }
  0x2c   :  { %466 = vmatpush1.bf16.msra.mxu1 %v465_v26 }
  0x2d   :  { %484 = vmatpush3.bf16.msra.mxu0 %v483_v23  ;;  %467 = vmatprep.subr.bf16.mxu1 %v531_v8 }
  0x2e   :  { %485 = vmatprep.subr.bf16.mxu0 %v531_v8 }
  0x30   :  { %469 = vmatpush1.bf16.msra.mxu1 %v468_v32 }
  0x31   :  { %487 = vmatpush3.bf16.msra.mxu0 %v486_v29  ;;  %470 = vmatprep.subr.bf16.mxu1 %v531_v8 }
  0x32   :  { %488 = vmatprep.subr.bf16.mxu0 %v531_v8 }
  0x34   :  { %472 = vmatpush1.bf16.msra.mxu1 %v471_v40 }
  0x35   :  { %490 = vmatpush3.bf16.msra.mxu0 %v489_v33  ;;  %473 = vmatprep.subr.bf16.mxu1 %v531_v8 }
  0x36   :  { %491 = vmatprep.subr.bf16.mxu0 %v531_v8 }
  0x38   :  { %475 = vmatpush1.bf16.msra.mxu1 %v474_v46 }
  0x39   :  { %493 = vmatpush3.bf16.msra.mxu0 %v492_v36 }
  0x3a   :  { %494 = vmatprep.subr.bf16.mxu0 %v531_v8 }
  0x3d   :  { %496 = vmatpush3.bf16.msra.mxu0 %v495_v42 }
  0x3e   :  { %497 = vmatprep.subr.bf16.mxu0 %v531_v8  ;;  %v62_v8 = vrot.slane %v57_v52, %v61_v51 }
  0x41   :  { %499 = vmatpush3.bf16.msra.mxu0 %v498_v48 }
  0xf7   :  { %v135_v55 = vpop.f32.mrb[0].mxu0 }
  0xf8   :  { %v136_v56 = vadd.f32 %v135_v55, %v62_v8  ;;  %v137_v57 = vpop.f32.mrb[1].mxu0 }
  0xf9   :  { %v138_v58 = vadd.f32 %v137_v57, %v66_v54 }
  0xfa   :  { %v140_v59 = vmax.f32 %v136_v56, 0.0 }
  0xfb   :  { %v141_v60 = vmax.f32 %v138_v58, 0.0 }
  0xfc   :  { %v249_v61 = vmul.f32 %v140_v59, %v140_v59 }
  0xfd   :  { %355 = vmatprep.mubr.msk.f32.mxu1 %vm173_vm1, %v141_v60 }
  0xfe   :  { %242 = vmatmul.mubr.f32.vlgmr.msra.gmra.mrb[0].mxu1 %v140_v59  ;;  %406 = vmatmul.mubr.f32.vlgmr.msra.gmra.mrb[2].mxu0 %v249_v61 }
 0x1d1   :  { %v243_v62 = vpop.f32.mrb[0].mxu1  ;;  %v332_v63 = vpop.f32.mrb[2].mxu0 }
 0x1d2   :  { %v244_v0 = vadd.f32 %v354_v7, %v243_v62  ;;  %v336_v1 = vmax.f32 %v332_v63, 1e-24  ;;  %v245_v2 = vpop.f32.mrb[1].mxu1  ;;  %v407_v3 = vpop.f32.mrb[3].mxu0 }
 0x1d4   :  { %248 = vst.msk [vmem:[#allocation2 + $0x8] sm:$0xff] %vm247_vm2, %v244_v0  ;;  %504 = vrsqrt.f32 %v336_v1 }
 0x1de   :  { %v505_v4 = vpop.eup %504 }
 0x1df   :  { %v338_v5 = vmul.f32 %v505_v4, %v140_v59 }
 0x1e1   :  { %339 = vst [vmem:[#allocation2] sm:$0xff] %v338_v5 }
 0x1e2   :  { %517 = shalt.err (!%p514_p4)
}
 0x1e3   :  { %s518_s23 = scalar_lea.hbm %s834_s6, 256 }
 0x1e4   :  { %p519_p5 = scmp.ne.s32.totalorder %s834_s6, %s518_s23  ;;  %p522_p6 = scmp.lt.u32.totalorder %s518_s23, %s834_s6 }
 0x1e6   :  { %p524_p7 = pnand %p522_p6, %p519_p5 }
 0x1e8   :  { %527 = shalt.err (!%p524_p7)
}
 0x1e9   :  { %349 = dma.vmem_to_hbm [thread:$0]  %s347_s20, 256, %s834_s6, [#allocation3]  }
 0x1ea   :  { %528 = dma.done.wait [#allocation3], 256  }
 0x1eb   :  { %529 = vsyncadd [#allocation3], 4294967040 }
 0x1ec   :  { %353 = vsyncpa [#allocation3], 1 }

</bundles_post_ra>
